<compile_context>
chip_gen: v7x
topology: tpu7x:2x2x1
jax: 0.10.0
libtpu: 0.0.40
codegen_flags: <defaults>
</compile_context>

<pallas_src>
import functools

import jax
import jax.numpy as jnp
from jax.experimental import pallas as pl
from jax.experimental.pallas import tpu as pltpu


def _enhanced_block_kernel(x_ref, w1t_ref, w2_ref, a1t_ref, a2t_ref,
                           out_ref, e_ref, *, skip: bool):
    """One batch tile (TB batch elements) per grid step.

    x_ref   : (TB, C, H)  input tile
    w1t_ref : (H, H//2)   comp.Linear1 weight, (in, out) layout
    w2_ref  : (1, H//2)   comp.Linear2 weight (used as a VPU row, no matmul)
    a1t_ref : (C, C//2)   activate.Linear1 weight, (in, out) layout
    a2t_ref : (C//2, C)   activate.Linear2 weight, (in, out) layout
    out_ref : (TB, C, H)  output tile
    e_ref   : (TB, C)     excitation E, lane-dense (C on the lane axis)
    """
    TB, C, H = x_ref.shape
    H2 = w1t_ref.shape[1]

    x = x_ref[...]                                    # (TB, C, H)
    x2d = x.reshape(TB * C, H)                        # merge leading dims (cheap)

    # ---- comp Linear(H -> H//2, no bias) + ReLU: one MXU matmul ------------
    h1 = jnp.maximum(
        jnp.dot(x2d, w1t_ref[...], preferred_element_type=jnp.float32), 0.0)

    # ---- comp Linear(H//2 -> 1, no bias): output width 1, so use a VPU
    # multiply + lane reduction instead of a 1-column MXU pass.
    h1_3d = h1.reshape(TB, C, H2)                     # split leading dim (cheap)
    s = jnp.sum(h1_3d * w2_ref[...], axis=-1)         # (TB, C), f32

    # ---- activate: Linear(C -> C//2) -> ReLU -> Linear(C//2 -> C) -> Sigmoid,
    # in row form (TB, C): no per-batch slicing, no transposes.
    h2 = jnp.maximum(
        jnp.dot(s, a1t_ref[...], preferred_element_type=jnp.float32), 0.0)
    E = jax.nn.sigmoid(
        jnp.dot(h2, a2t_ref[...], preferred_element_type=jnp.float32))  # (TB, C)

    # ---- excitation with skip fused into the scale: x*E + x == x*(E+1) -----
    scale = (E + 1.0) if skip else E                  # (TB, C), f32
    out_ref[...] = (x * scale[:, :, None].astype(x.dtype)).astype(out_ref.dtype)

    # ---- lane-dense E store (C on the lane axis), in the output dtype ------
    e_ref[...] = E.astype(e_ref.dtype)


def _tpu_vmem_capacity_bytes():
    try:
        info = pltpu.get_tpu_info()
        cap = getattr(info, "vmem_capacity_bytes", None)
        if cap:
            return int(cap)
    except Exception:
        pass
    return 64 << 20      # conservative fallback (v7x per-TC VMEM)


def _pick_batch_tile(B, C, H, x_itemsize, w_bytes, budget_bytes, max_tb=512):
    """Pick the batch tile TB:
       - TB divides B,
       - (TB % 8 == 0) or (TB == B), so the (TB, C) E block keeps its last two
         dims sublane-aligned or full,
       - VMEM accounting covers double-buffered x/out/E blocks, the f32 h1
         temp, f32 temp headroom, and double-buffered resident weights,
       - prefer a grid of length >= 4 (both v7x TensorCores get >= 2 steps),
         then >= 2, otherwise the largest fitting tile.
    """
    H2 = max(1, H // 2)
    per_tb = 2 * 2 * C * H * x_itemsize    # x + out blocks, double-buffered
    per_tb += C * H2 * 4                   # h1 f32 temp
    per_tb += C * H * 4                    # f32 temp / vreg headroom
    per_tb += 2 * C * x_itemsize           # E block (tiny)
    avail = max(budget_bytes - 2 * w_bytes, per_tb)
    cap = max(1, min(max_tb, avail // per_tb))

    cands = [tb for tb in range(1, B + 1)
             if B % tb == 0 and (tb % 8 == 0 or tb == B)]
    fitting = [tb for tb in cands if tb <= cap]
    if not fitting:
        return min(cands)                  # always contains B
    for min_grid in (4, 2):
        multi = [tb for tb in fitting if B // tb >= min_grid]
        if multi:
            return max(multi)
    return max(fitting)


def enhanced_block(inp, w1, w2, a1, a2, *, skip=True):
    """inp: (B, C, H). Weights in PyTorch (out_features, in_features) layout:
       w1: (H//2, H), w2: (1, H//2), a1: (C//2, C), a2: (C, C//2).
       Returns (out, E) with out: (B, C, H), E: (B, 1, C)."""
    B, C, H = inp.shape
    H2 = w1.shape[0]
    C2 = a1.shape[0]

    # One-time (in, out)-layout weights: plain MXU matmuls in the kernel, no
    # per-grid-step RHS relayout.  w2 stays (1, H//2) (VPU row).
    w1t = jnp.transpose(w1)                # (H, H2)
    a1t = jnp.transpose(a1)                # (C, C2)
    a2t = jnp.transpose(a2)                # (C2, C)

    vmem_cap = _tpu_vmem_capacity_bytes()
    budget_bytes = min(int(vmem_cap * 0.6), 96 << 20)
    vmem_limit = min(int(vmem_cap * 0.75), 100 << 20)

    w_item = jnp.dtype(w1.dtype).itemsize
    w_bytes = (w1t.size + w2.size + a1t.size + a2t.size) * w_item
    TB = _pick_batch_tile(B, C, H, jnp.dtype(inp.dtype).itemsize,
                          w_bytes, budget_bytes)
    grid = (B // TB,)

    kernel = functools.partial(_enhanced_block_kernel, skip=skip)

    out, e2d = pl.pallas_call(
        kernel,
        out_shape=(
            jax.ShapeDtypeStruct((B, C, H), inp.dtype),
            jax.ShapeDtypeStruct((B, C), inp.dtype),
        ),
        grid_spec=pltpu.PrefetchScalarGridSpec(
            num_scalar_prefetch=0,
            grid=grid,
            in_specs=[
                pl.BlockSpec((TB, C, H), lambda i: (i, 0, 0)),
                pl.BlockSpec((H, H2), lambda i: (0, 0)),
                pl.BlockSpec((1, H2), lambda i: (0, 0)),
                pl.BlockSpec((C, C2), lambda i: (0, 0)),
                pl.BlockSpec((C2, C), lambda i: (0, 0)),
            ],
            out_specs=[
                pl.BlockSpec((TB, C, H), lambda i: (i, 0, 0)),
                pl.BlockSpec((TB, C), lambda i: (i, 0)),
            ],
        ),
        compiler_params=pltpu.CompilerParams(
            dimension_semantics=("parallel",),
            vmem_limit_bytes=vmem_limit,
        ),
    )(inp, w1t, w2, a1t, a2t)

    # (B, C) -> (B, 1, C): metadata-only expand_dims (no HBM transpose pass).
    E = e2d[:, None, :]
    return out, E


def _reference(inp, w1, w2, a1, a2, skip=True):
    """Plain-JAX replica of the PyTorch forward, for verification."""
    s = jnp.maximum(inp @ w1.T, 0.0) @ w2.T                   # (B, C, 1)
    st = jnp.transpose(s, (0, 2, 1))                          # (B, 1, C)
    e = jax.nn.sigmoid(jnp.maximum(st @ a1.T, 0.0) @ a2.T)    # (B, 1, C)
    out = inp * jnp.transpose(e, (0, 2, 1))
    if skip:
        out = out + inp
    return out, e


if __name__ == "__main__":
    B, C, H = 16, 8, 32          # batch, channel, hid_size (small demo shapes)
    H2, C2 = H // 2, C // 2

    key = jax.random.PRNGKey(0)
    k_x, k_w1, k_w2, k_a1, k_a2 = jax.random.split(key, 5)

    x = jax.random.normal(k_x, (B, C, H), dtype=jnp.float32)

    # Deterministic init mimicking nn.Linear default: U(-1/sqrt(fan_in), +1/sqrt(fan_in))
    def init(k, shape):
        fan_in = shape[1]
        bound = 1.0 / (fan_in ** 0.5)
        return jax.random.uniform(k, shape, jnp.float32, -bound, bound)

    w1 = init(k_w1, (H2, H))     # comp.Linear(H -> H//2), bias=False
    w2 = init(k_w2, (1, H2))     # comp.Linear(H//2 -> 1), bias=False
    a1 = init(k_a1, (C2, C))     # activate.Linear(C -> C//2), bias=False
    a2 = init(k_a2, (C, C2))     # activate.Linear(C//2 -> C), bias=False

    out, E = enhanced_block(x, w1, w2, a1, a2, skip=True)
    out = jax.block_until_ready(out)
    E = jax.block_until_ready(E)

    ref_out, ref_E = _reference(x, w1, w2, a1, a2, skip=True)

    assert out.shape == (B, C, H) and E.shape == (B, 1, C)
    assert jnp.allclose(out, ref_out, atol=1e-4, rtol=1e-4), \
        float(jnp.max(jnp.abs(out - ref_out)))
    assert jnp.allclose(E, ref_E, atol=1e-4, rtol=1e-4), \
        float(jnp.max(jnp.abs(E - ref_E)))

    print("KERNEL_OK")
</pallas_src>

<mosaic_0001>
module attributes {stable_mosaic.version = 11 : i64} {
  func.func @_enhanced_block_kernel(%arg0: i32, %arg1: memref<8x8x32xf32, #tpu.memory_space<vmem>>, %arg2: memref<32x16xf32, #tpu.memory_space<vmem>>, %arg3: memref<1x16xf32, #tpu.memory_space<vmem>>, %arg4: memref<8x4xf32, #tpu.memory_space<vmem>>, %arg5: memref<4x8xf32, #tpu.memory_space<vmem>>, %arg6: memref<8x8x32xf32, #tpu.memory_space<vmem>>, %arg7: memref<8x8xf32, #tpu.memory_space<vmem>>) attributes {dimension_semantics = [#tpu.dimension_semantics<parallel>], iteration_bounds = array<i64: 2>, scalar_prefetch = 0 : i64, scratch_operands = 0 : i64, tpu.core_type = #tpu.core_type<tc>, window_params = [{transform_indices = @transform_0, window_bounds = array<i64: 8, 8, 32>}, {pipeline_mode = #tpu.pipeline_mode<synchronous>, transform_indices = @transform_1, window_bounds = array<i64: 32, 16>}, {pipeline_mode = #tpu.pipeline_mode<synchronous>, transform_indices = @transform_2, window_bounds = array<i64: 1, 16>}, {pipeline_mode = #tpu.pipeline_mode<synchronous>, transform_indices = @transform_3, window_bounds = array<i64: 8, 4>}, {pipeline_mode = #tpu.pipeline_mode<synchronous>, transform_indices = @transform_4, window_bounds = array<i64: 4, 8>}, {transform_indices = @transform_5, window_bounds = array<i64: 8, 8, 32>}, {transform_indices = @transform_6, window_bounds = array<i64: 8, 8>}]} {
    %c0 = arith.constant 0 : index
    %c0_0 = arith.constant 0 : index
    %c0_1 = arith.constant 0 : index
    %0 = vector.load %arg1[%c0, %c0_0, %c0_1] : memref<8x8x32xf32, #tpu.memory_space<vmem>>, vector<8x8x32xf32>
    %1 = vector.shape_cast %0 : vector<8x8x32xf32> to vector<64x32xf32>
    %c0_2 = arith.constant 0 : index
    %c0_3 = arith.constant 0 : index
    %2 = vector.load %arg2[%c0_2, %c0_3] : memref<32x16xf32, #tpu.memory_space<vmem>>, vector<32x16xf32>
    %cst = arith.constant dense<0.000000e+00> : vector<64x16xf32>
    %3 = tpu.matmul %1, %2, %cst {dimension_numbers = #tpu.dot_dimension_numbers<[1], [0], [0], [1], [0, 0, 1, 1], [], []>} : vector<64x32xf32>, vector<32x16xf32>, vector<64x16xf32> -> vector<64x16xf32>
    %cst_4 = arith.constant 0.000000e+00 : f32
    %4 = vector.broadcast %cst_4 : f32 to vector<64x16xf32>
    %5 = arith.maximumf %3, %4 : vector<64x16xf32>
    %6 = vector.shape_cast %5 : vector<64x16xf32> to vector<8x8x16xf32>
    %c0_5 = arith.constant 0 : index
    %c0_6 = arith.constant 0 : index
    %7 = vector.load %arg3[%c0_5, %c0_6] : memref<1x16xf32, #tpu.memory_space<vmem>>, vector<1x16xf32>
    %8 = vector.shape_cast %7 : vector<1x16xf32> to vector<1x1x16xf32>
    %9 = vector.broadcast %8 : vector<1x1x16xf32> to vector<8x8x16xf32>
    %10 = arith.mulf %6, %9 : vector<8x8x16xf32>
    %cst_7 = arith.constant dense<0.000000e+00> : vector<8x8xf32>
    %11 = vector.multi_reduction <add>, %10, %cst_7 [2] : vector<8x8x16xf32> to vector<8x8xf32>
    %c0_8 = arith.constant 0 : index
    %c0_9 = arith.constant 0 : index
    %12 = vector.load %arg4[%c0_8, %c0_9] : memref<8x4xf32, #tpu.memory_space<vmem>>, vector<8x4xf32>
    %cst_10 = arith.constant dense<0.000000e+00> : vector<8x4xf32>
    %13 = tpu.matmul %11, %12, %cst_10 {dimension_numbers = #tpu.dot_dimension_numbers<[1], [0], [0], [1], [0, 0, 1, 1], [], []>} : vector<8x8xf32>, vector<8x4xf32>, vector<8x4xf32> -> vector<8x4xf32>
    %cst_11 = arith.constant 0.000000e+00 : f32
    %14 = vector.broadcast %cst_11 : f32 to vector<8x4xf32>
    %15 = arith.maximumf %13, %14 : vector<8x4xf32>
    %c0_12 = arith.constant 0 : index
    %c0_13 = arith.constant 0 : index
    %16 = vector.load %arg5[%c0_12, %c0_13] : memref<4x8xf32, #tpu.memory_space<vmem>>, vector<4x8xf32>
    %cst_14 = arith.constant dense<0.000000e+00> : vector<8x8xf32>
    %17 = tpu.matmul %15, %16, %cst_14 {dimension_numbers = #tpu.dot_dimension_numbers<[1], [0], [0], [1], [0, 0, 1, 1], [], []>} : vector<8x4xf32>, vector<4x8xf32>, vector<8x8xf32> -> vector<8x8xf32>
    %18 = arith.negf %17 : vector<8x8xf32>
    %19 = math.exp %18 : vector<8x8xf32>
    %cst_15 = arith.constant 1.000000e+00 : f32
    %20 = vector.broadcast %cst_15 : f32 to vector<8x8xf32>
    %21 = arith.addf %20, %19 : vector<8x8xf32>
    %22 = arith.divf %20, %21 : vector<8x8xf32>
    %cst_16 = arith.constant 1.000000e+00 : f32
    %23 = vector.broadcast %cst_16 : f32 to vector<8x8xf32>
    %24 = arith.addf %22, %23 : vector<8x8xf32>
    %25 = vector.shape_cast %24 : vector<8x8xf32> to vector<8x8x1xf32>
    %26 = vector.broadcast %25 : vector<8x8x1xf32> to vector<8x8x32xf32>
    %27 = arith.mulf %0, %26 : vector<8x8x32xf32>
    %c0_17 = arith.constant 0 : index
    %c0_18 = arith.constant 0 : index
    %c0_19 = arith.constant 0 : index
    %28 = vector.load %arg6[%c0_17, %c0_18, %c0_19] : memref<8x8x32xf32, #tpu.memory_space<vmem>>, vector<8x8x32xf32>
    tpu.vector_store %arg6[%c0_17, %c0_18, %c0_19], %27 {strides = array<i32>} : memref<8x8x32xf32, #tpu.memory_space<vmem>>, vector<8x8x32xf32>,
    %c0_20 = arith.constant 0 : index
    %c0_21 = arith.constant 0 : index
    %29 = vector.load %arg7[%c0_20, %c0_21] : memref<8x8xf32, #tpu.memory_space<vmem>>, vector<8x8xf32>
    tpu.vector_store %arg7[%c0_20, %c0_21], %22 {strides = array<i32>} : memref<8x8xf32, #tpu.memory_space<vmem>>, vector<8x8xf32>,
    return
  }
  func.func @transform_0(%arg0: i32) -> (i32, i32, i32) {
    %c0_i32 = arith.constant 0 : i32
    %c0_i32_0 = arith.constant 0 : i32
    %c0_i32_1 = arith.constant 0 : i32
    return %arg0, %c0_i32, %c0_i32_0 : i32, i32, i32
  }
  func.func @transform_1(%arg0: i32) -> (i32, i32) {
    %c0_i32 = arith.constant 0 : i32
    %c0_i32_0 = arith.constant 0 : i32
    %c0_i32_1 = arith.constant 0 : i32
    return %c0_i32, %c0_i32_0 : i32, i32
  }
  func.func @transform_2(%arg0: i32) -> (i32, i32) {
    %c0_i32 = arith.constant 0 : i32
    %c0_i32_0 = arith.constant 0 : i32
    %c0_i32_1 = arith.constant 0 : i32
    return %c0_i32, %c0_i32_0 : i32, i32
  }
  func.func @transform_3(%arg0: i32) -> (i32, i32) {
    %c0_i32 = arith.constant 0 : i32
    %c0_i32_0 = arith.constant 0 : i32
    %c0_i32_1 = arith.constant 0 : i32
    return %c0_i32, %c0_i32_0 : i32, i32
  }
  func.func @transform_4(%arg0: i32) -> (i32, i32) {
    %c0_i32 = arith.constant 0 : i32
    %c0_i32_0 = arith.constant 0 : i32
    %c0_i32_1 = arith.constant 0 : i32
    return %c0_i32, %c0_i32_0 : i32, i32
  }
  func.func @transform_5(%arg0: i32) -> (i32, i32, i32) {
    %c0_i32 = arith.constant 0 : i32
    %c0_i32_0 = arith.constant 0 : i32
    %c0_i32_1 = arith.constant 0 : i32
    return %arg0, %c0_i32, %c0_i32_0 : i32, i32, i32
  }
  func.func @transform_6(%arg0: i32) -> (i32, i32) {
    %c0_i32 = arith.constant 0 : i32
    %c0_i32_0 = arith.constant 0 : i32
    return %arg0, %c0_i32 : i32, i32
  }
}

</mosaic_0001>

<bundles_post_ra>
// kernel: tpu_custom_call.1
= control target key start
LH: loop header
LB: loop body
LE: loop exit
PB: predicated region body
PF: predicated region fallthrough
CT: control target
= control target key end

     0   :  { %12 = vsyncpa [#allocation3], 0  ;;  %s1439_s0 = inlined_call_operand.hbm [shape: f32[16,8,32], index: 0, kind: input, shape index: {}]   ;;  %s1440_s1 = inlined_call_operand.vmem [shape: f32[32,16], index: 1, kind: input, shape index: {}]   ;;  %s1441_s2 = inlined_call_operand.vmem [shape: f32[1,16], index: 2, kind: input, shape index: {}]   ;;  %s1442_s3 = inlined_call_operand.vmem [shape: f32[8,4], index: 3, kind: input, shape index: {}]   ;;  %s1443_s4 = inlined_call_operand.vmem [shape: f32[4,8], index: 4, kind: input, shape index: {}]   ;;  %s1444_s5 = inlined_call_operand.hbm [shape: f32[16,8,32], index: 5, kind: output, shape index: {0}]   ;;  %s1445_s6 = inlined_call_operand.vmem [shape: f32[16,8], index: 6, kind: output, shape index: {1}]  }
   0x1   :  { %14 = vsyncpa [#allocation3 + $0x1], 0 }
   0x2   :  { %15 = vsyncpa [#allocation4], 0 }
   0x3   :  { %17 = vsyncpa [#allocation4 + $0x1], 0  ;;  %s1166_s21 = smov 0   ;;  %s1168_s22 = smov 0  }
   0x4   :  { %s1170_s23 = smov 0   ;;  %s1172_s24 = smov 0  }
   0x5 LB: > { %s1187_s25 = sadd.s32 4294967295, %s1121_s24   ;;  %s881_s26 = sadd.s32 4294967294, %s1121_s24   ;;  %s1121_s24 = sphi %s1172_s24, %s1458_s24   ;;  %s1117_s23 = sphi %s1170_s23, %s1457_s23   ;;  %s1113_s22 = sphi %s1168_s22, %s1456_s22   ;;  %s1109_s21 = sphi %s1166_s21, %s1455_s21  }
   0x6   : > { %s1191_s27 = sadd.s32 1, %s1121_s24   ;;  %s30_s28 = sadd.s32 1, %s1117_s23 }
   0x7   : > { %s27_s29 = ssub.s32 %s1121_s24, %s1191_s27  ;;  %p37_p0 = scmp.ne.s32.totalorder %s1117_s23, %s1113_s22 }
   0x8   : > { %p28_p1 = scmp.eq.s32.totalorder %s27_s29, 0  ;;  %p38_p2 = scmp.eq.s32.totalorder %s1121_s24, 0 }
   0x9   : > { %p43_p3 = scmp.ne.s32.totalorder %s1113_s22, %s1109_s21  ;;  %p44_p4 = scmp.eq.s32.totalorder %s1187_s25, 0 }
   0xa   : > { %s1203_s30 = scalar_select %p28_p1, %s1117_s23, %s30_s28  }
   0xb   : > { %p1205_p5 = por %p38_p2, %p37_p0  ;;  %p1209_p6 = por %p44_p4, %p43_p3 }
   0xc   : > { %p151_p7 = scmp.eq.s32.totalorder %s1187_s25, 1  ;;  %p157_p8 = scmp.eq.s32.totalorder %s881_s26, 1 }
   0xd   : > { %p981_p10 = scmp.lt.s32.totalorder %s1121_s24, 2  ;;  %s215_s11 = sand.u32 1, %s1117_s23  }
   0xe   : > { %p1216_p11 = por %p151_p7, %p37_p0  ;;  %p1220_p12 = por %p157_p8, %p43_p3 }
   0xf   : > { %s909_s12 = sshll.u32 %s1121_s24, 10  ;;  %s884_s13 = sshll.u32 %s215_s11, 6 }
  0x10   : > { %s1449_s9 = scalar_select %p1216_p11, 1, 0 }
  0x11   : > { %s1450_s10 = scalar_select %p1220_p12, 1, 0 }
  0x12   : > { %s1229_s16 = scalar_lea.hbm %s1439_s0, %s909_s12  ;;  %s219_s17 = scalar_lea.vmem [#allocation2], %s884_s13 }
  0x13   : > { %s226_s18 = sshll.u32 %s219_s17, 4  ;;  %p1233_p13 = pnand %p981_p10, %p1205_p5  ;;  %s1237_s18 = int_to_ptr.vmem [resolvable:$true] %s226_s18 }
  0x14   : > { %s1239_s20 = scalar_lea.sflag [#allocation3], %s215_s11  ;;  %s1025_s26 = scalar_lea.hbm %s1229_s16, 1024 }
  0x15   : > { %p1026_p0 = scmp.ne.s32.totalorder %s1229_s16, %s1025_s26  ;;  %p1027_p1 = pneg %p1233_p13 }
  0x16   : > { %s1030_s7 = scalar_lea.hbm %s1439_s0, 2048  ;;  %p1031_p4 = scmp.lt.u32.totalorder %s1229_s16, %s1439_s0 }
  0x17   : > { %p1028_p2 = pnand %p1027_p1, %p1026_p0  ;;  %p1032_p5 = scmp.lt.u32.totalorder %s1030_s7, %s1025_s26 }
  0x18   : > { %p1034_p8 = scmp.lt.u32.totalorder %s1025_s26, %s1229_s16 }
  0x19   : > { %p1029_p3 = pneg %p1028_p2  ;;  %p1033_p7 = por %p1032_p5, %p1031_p4 }
  0x1b   : > { %p1035_p10 = por %p1034_p8, %p1033_p7 }
  0x1d   : > { %p1036_p9 = pnand %p1035_p10, %p1029_p3 }
  0x1f   : > { %1039 = shalt.err (!%p1036_p9)
}
  0x20   : > { %s1040_s11 = scalar_lea.vmem %s1237_s18, 1024  ;;  %s1123_s14 = smov [#allocation2]  }
  0x21   : > { %p1041_p0 = scmp.ne.s32.totalorder %s1237_s18, %s1040_s11  ;;  %s1045_s15 = sshll.u32 %s1123_s14, 4  ;;  %s1046_s15 = int_to_ptr.vmem [resolvable:$false] %s1045_s15 }
  0x22   : > { %s1047_s17 = scalar_lea.vmem %s1046_s15, 2048  ;;  %p1048_p11 = scmp.lt.s32.totalorder %s1237_s18, %s1046_s15 }
  0x23   : > { %p1043_p2 = pnand %p1041_p0, %p1027_p1  ;;  %p1049_p4 = scmp.lt.s32.totalorder %s1047_s17, %s1040_s11 }
  0x25   : > { %p1044_p12 = pneg %p1043_p2  ;;  %p1050_p5 = por %p1049_p4, %p1048_p11 }
  0x27   : > { %p1051_p7 = pnand %p1050_p5, %p1044_p12 }
  0x29   : > { %1054 = shalt.err (!%p1051_p7)
}
  0x2a   : > { %s1124_s26 = smov 128   ;;  %s1125_s28 = smov 8  }
  0x2b   : > { %976 = dma.hbm_to_vmem [thread:$0]  (!%p1233_p13), %s1229_s16, 1024, %s1237_s18, %s1239_s20, %s1124_s26, %s1124_s26, %s1125_s28  }
  0x2c   : > { %p887_p9 = scmp.ge.s32.totalorder %s1121_s24, 1  ;;  %p234_p1 = scmp.lt.s32.totalorder %s1121_s24, 3 }
  0x2e   : > { %p235_p3 = pnand %p887_p9, %p234_p1 }
  0x2f   : > { %s1270_s29 = sand.u32 (!%p235_p3), 1, %s1113_s22  }
  0x30   : > { %238 = sbr.rel (%p235_p3) target bundleno = 1049 (0x419), region = 40  ;;  %s888_s7 = sshll.u32 (!%p235_p3), %s1270_s29, 6 }
  0x31   : > { %s241_s12 = scalar_lea.sflag (!%p235_p3), [#allocation3], %s1270_s29  ;;  %s1276_s13 = scalar_lea.vmem (!%p235_p3), [#allocation2], %s888_s7 }
  0x37   : > { %1100 = dma.done.wait (%p1209_p6), %s241_s12, 1024  }
  0x38   : > { %1102 = vsyncadd (%p1209_p6), %s241_s12, 4294966272  ;;  %vm295_vm0 = vcmask 261120   ;;  %v291_v0 = vld [vmem:[%s1440_s1] sm:$0xff]  ;;  %v292_v1 = vld [vmem:[%s1440_s1 + $0x8] sm:$0xff]  ;;  %vm448_vm1 = vcmask 130048   ;;  %v1126_v48 = vmov 0.0   ;;  %v482_v49 = vlaneseq }
  0x39   : > { %v293_v2 = vld [vmem:[%s1440_s1 + $0x10] sm:$0xff]  ;;  %v957_v3 = vpack.c.bf16 %v292_v1, %v291_v0  ;;  %v294_v4 = vld [vmem:[%s1440_s1 + $0x18] sm:$0xff]  ;;  %v1295_v5 = vld [vmem:[%s1276_s13] sm:$0xff]  ;;  %vm1127_vm2 = vmmov 0   ;;  %vm516_vm3 = vcmask 1041409   ;;  %vm518_vm4 = vcmask 1042434  }
  0x3a   : > { %v961_v6 = vpack.c.bf16 %v294_v4, %v293_v2  ;;  %935 = vmatprep.mubr.msk.f32.mxu0 %vm295_vm0, %v1295_v5  ;;  %v1300_v7 = vld [vmem:[%s1276_s13 + $0x30] sm:$0xff]  ;;  %v1305_v8 = vld [vmem:[%s1276_s13 + $0x8] sm:$0xff]  ;;  %v1308_v9 = vld [vmem:[%s1276_s13 + $0x38] sm:$0xff]  ;;  %v483_v50 = vand.u32 127, %v482_v49  ;;  %v1349_v51 = vshrl.u32 %v482_v49, 7  ;;  %vm520_vm5 = vcmask 1043459  }
  0x3b   : > { %958 = vmatprep.subr.bf16.mxu0 %v957_v3  ;;  %965 = vmatprep.subr.bf16.mxu1 %v957_v3  ;;  %v1311_v10 = vld [vmem:[%s1276_s13 + $0x10] sm:$0xff]  ;;  %v1320_v11 = vld [vmem:[%s1276_s13 + $0x18] sm:$0xff]  ;;  %v1323_v12 = vld [vmem:[%s1276_s13 + $0x20] sm:$0xff]  ;;  %vm522_vm6 = vcmask 1044484   ;;  %vm524_vm7 = vcmask 1045509   ;;  %vm526_vm8 = vcmask 1046534  }
  0x3c   : > { %960 = vmatpush3.bf16.msra.mxu0 %v957_v3  ;;  %967 = vmatpush3.bf16.msra.mxu1 %v957_v3  ;;  %v1330_v13 = vld [vmem:[%s1276_s13 + $0x28] sm:$0xff]  ;;  %v899_v15 = vld [vmem:[%s1441_s2] ss:$0 sm:$0xff]  ;;  %v486_v53 = vsub.s32 %v483_v50, %v1349_v51  ;;  %vm528_vm9 = vcmask 1047559   ;;  %vm530_vm10 = vcmask 64512   ;;  %vm609_vm11 = vcmask 1043456  }
  0x3d   : > { %962 = vmatprep.subr.bf16.mxu0 %v961_v6  ;;  %966 = vmatprep.subr.bf16.mxu1 %v961_v6  ;;  %v473_v47 = vld [vmem:[%s1442_s3] sm:$0xff]  ;;  %vm605_vm12 = vcmask 31744   ;;  %p279_p6 = scmp.lt.s32.totalorder %s1187_s25, 1  ;;  %s270_s15 = scalar_lea.vmem [#allocation5], %s888_s7 }
  0x3e   : > { %944 = vmatprep.mubr.msk.f32.mxu1 %vm295_vm0, %v1300_v7  ;;  %s910_s7 = sshll.u32 %s1187_s25, 10  ;;  %s781_s8 = sshll.u32 %s270_s15, 4  ;;  %s1393_s8 = int_to_ptr.vmem [resolvable:$true] %s781_s8 }
  0x3f   : > { %s280_s18 = scalar_select %p279_p6, %s1187_s25, 1 }
  0x40   : > { %964 = vmatpush3.bf16.msra.mxu0 %v961_v6  ;;  %968 = vmatpush3.bf16.msra.mxu1 %v961_v6  ;;  %s1391_s28 = scalar_lea.hbm %s1444_s5, %s910_s7  ;;  %s764_s12 = scalar_lea.sflag [#allocation4], %s1270_s29 }
  0x41   : > { %947 = vmatprep.subr.mxu1 %v1126_v48  ;;  %s890_s19 = sshll.u32 %s280_s18, 3  ;;  %s1055_s25 = scalar_lea.vmem %s1393_s8, 1024 }
  0x42   : > { %s282_s14 = scalar_lea.vmem %s1445_s6, %s890_s19  ;;  %p1056_p11 = scmp.ne.s32.totalorder %s1393_s8, %s1055_s25 }
  0x43   : > { %936 = vmatmul.mubr.msk.f32.vlgmr.msra.gmra.mrb[0].mxu0 %vm295_vm0, %v1305_v8  ;;  %945 = vmatmul.mubr.msk.f32.vlgmr.msra.gmra.mrb[0].mxu1 %vm295_vm0, %v1308_v9  ;;  %p1452_p12 = scmp.ne.s32.totalorder %s1449_s9, 0  ;;  %s1128_s13 = smov [#allocation5]  }
  0x44   : > { %938 = vmatprep.mubr.msk.f32.mxu0 %vm295_vm0, %v1311_v10  ;;  %948 = vmatpush3.msra.mxu1 %v473_v47  ;;  %s1059_s16 = sshll.u32 %s1128_s13, 4  ;;  %s1060_s16 = int_to_ptr.vmem [resolvable:$false] %s1059_s16 }
  0x45   : > { %949 = vmatprep.mubr.msk.f32.mxu1 %vm1127_vm2, %v1126_v48  ;;  %952 = vmatprep.subr.mxu1 %v1126_v48  ;;  %p1057_p13 = pnand %p1056_p11, %p1452_p12  ;;  %s1061_s18 = scalar_lea.vmem %s1060_s16, 2048 }
  0x46   : > { %p1062_p10 = scmp.lt.s32.totalorder %s1393_s8, %s1060_s16  ;;  %p1063_p0 = scmp.lt.s32.totalorder %s1061_s18, %s1055_s25 }
  0x47   : > { %939 = vmatmul.mubr.msk.f32.gmra.mrb[2].mxu0 %vm295_vm0, %v1320_v11  ;;  %p1058_p8 = pneg %p1057_p13 }
  0x48   : > { %941 = vmatprep.mubr.msk.f32.mxu0 %vm295_vm0, %v1323_v12  ;;  %p1064_p2 = por %p1063_p0, %p1062_p10 }
  0x4a   : > { %p1065_p4 = pnand %p1064_p2, %p1058_p8 }
  0x4b   : > { %942 = vmatmul.mubr.msk.f32.gmra.mrb[4].mxu0 %vm295_vm0, %v1330_v13 }
 0x116   : > { %v937_v14 = vpop.f32.mrb[0].mxu0  ;;  %v946_v16 = vpop.f32.mrb[0].mxu1 }
 0x117   : > { %v426_v17 = vmax.f32 %v937_v14, 0.0  ;;  %v386_v18 = vpop.f32.mrb[1].mxu0  ;;  %v416_v19 = vpop.f32.mrb[1].mxu1  ;;  %v432_v39 = vmax.f32 %v946_v16, 0.0 }
 0x118   : > { %v425_v20 = vmax.f32 %v386_v18, 0.0  ;;  %v431_v30 = vmax.f32 %v416_v19, 0.0  ;;  %v604_v19 = vld [vmem:[%s1443_s4] sm:$0xf] }
 0x119   : > { %v441_v21 = vmul.f32 %v899_v15, %v426_v17  ;;  %v447_v45 = vmul.f32 %v899_v15, %v432_v39  ;;  %v713_v39 = vsub.s32 3, %v1349_v51 }
 0x11a   : > { %v940_v22 = vpop.f32.mrb[2].mxu0  ;;  %v440_v26 = vmul.f32 %v899_v15, %v425_v20  ;;  %v446_v38 = vmul.f32 %v899_v15, %v431_v30  ;;  %v692_v30 = vsub.s32 0, %v1349_v51 }
 0x11b   : > { %v428_v23 = vmax.f32 %v940_v22, 0.0  ;;  %v396_v24 = vpop.f32.mrb[3].mxu0  ;;  %v452_v25 = vsel %vm448_vm1, %v441_v21, 0.0  ;;  %v470_v46 = vsel %vm448_vm1, %v447_v45, 0.0  ;;  %v741_v45 = vsub.s32 7, %v1349_v51 }
 0x11c   : > { %v427_v27 = vmax.f32 %v396_v24, 0.0  ;;  %453 = vadd.xlane.f32.xlu0 %v452_v25  ;;  %v449_v33 = vsel %vm448_vm1, %v440_v26, 0.0  ;;  %v467_v43 = vsel %vm448_vm1, %v446_v38, 0.0 }
 0x11d   : > { %v443_v28 = vmul.f32 %v899_v15, %v428_v23 }
 0x11e   : > { %v943_v29 = vpop.f32.mrb[4].mxu0  ;;  %v442_v35 = vmul.f32 %v899_v15, %v427_v27 }
 0x11f   : > { %v430_v31 = vmax.f32 %v943_v29, 0.0  ;;  %v406_v32 = vpop.f32.mrb[5].mxu0  ;;  %v458_v34 = vsel %vm448_vm1, %v443_v28, 0.0  ;;  %v699_v29 = vsub.s32 1, %v1349_v51 }
 0x120   : > { %v429_v36 = vmax.f32 %v406_v32, 0.0  ;;  %450 = vadd.xlane.f32.xlu0 %v449_v33  ;;  %459 = vadd.xlane.f32.xlu1 %v458_v34  ;;  %v455_v40 = vsel %vm448_vm1, %v442_v35, 0.0  ;;  %v706_v35 = vsub.s32 2, %v1349_v51 }
 0x121   : > { %v445_v41 = vmul.f32 %v899_v15, %v430_v31 }
 0x122   : > { %v444_v37 = vmul.f32 %v899_v15, %v429_v36  ;;  %v720_v36 = vsub.s32 4, %v1349_v51 }
 0x123   : > { %v464_v44 = vsel %vm448_vm1, %v445_v41, 0.0 }
 0x124   : > { %456 = vadd.xlane.f32.xlu1 %v455_v40  ;;  %v461_v42 = vsel %vm448_vm1, %v444_v37, 0.0  ;;  %v734_v40 = vsub.s32 6, %v1349_v51 }
 0x125   : > { %462 = vadd.xlane.f32.xlu0 %v461_v42 }
 0x128   : > { %465 = vadd.xlane.f32.xlu1 %v464_v44 }
 0x129   : > { %468 = vadd.xlane.f32.xlu0 %v467_v43  ;;  %v727_v43 = vsub.s32 5, %v1349_v51 }
 0x12c   : > { %471 = vadd.xlane.f32.xlu1 %v470_v46 }
 0x1a9   : > { %v454_v52 = vpop.xlane.xlu0 %453 }
 0x1aa   : > { %v491_v57 = vrot.slane %v454_v52, %v486_v53 }
 0x1ad   : > { %v451_v54 = vpop.xlane.xlu0 %450  ;;  %v460_v55 = vpop.xlane.xlu1 %459 }
 0x1ae   : > { %v487_v56 = vrot.slane %v451_v54, %v486_v53  ;;  %v499_v62 = vrot.slane %v460_v55, %v486_v53 }
 0x1b0   : > { %v517_v61 = vsel %vm516_vm3, %v491_v57, %v487_v56 }
 0x1b1   : > { %v457_v58 = vpop.xlane.xlu1 %456 }
 0x1b2   : > { %v495_v59 = vrot.slane %v457_v58, %v486_v53  ;;  %v463_v60 = vpop.xlane.xlu0 %462 }
 0x1b3   : > { %v503_v63 = vrot.slane %v463_v60, %v486_v53 }
 0x1b4   : > { %v519_v0 = vsel %vm518_vm4, %v495_v59, %v517_v61 }
 0x1b5   : > { %v521_v1 = vsel %vm520_vm5, %v499_v62, %v519_v0  ;;  %v466_v2 = vpop.xlane.xlu1 %465 }
 0x1b6   : > { %v523_v3 = vsel %vm522_vm6, %v503_v63, %v521_v1  ;;  %v507_v4 = vrot.slane %v466_v2, %v486_v53  ;;  %v469_v6 = vpop.xlane.xlu0 %468 }
 0x1b7   : > { %v511_v14 = vrot.slane %v469_v6, %v486_v53 }
 0x1b8   : > { %v525_v15 = vsel %vm524_vm7, %v507_v4, %v523_v3 }
 0x1b9   : > { %v472_v16 = vpop.xlane.xlu1 %471  ;;  %v527_v18 = vsel %vm526_vm8, %v511_v14, %v525_v15 }
 0x1ba   : > { %v515_v17 = vrot.slane %v472_v16, %v486_v53 }
 0x1bc   : > { %v529_v20 = vsel %vm528_vm9, %v515_v17, %v527_v18 }
 0x1bd   : > { %950 = vmatmul.mubr.msk.f32.vlgmr.msra.gmra.mrb[2].mxu1 %vm530_vm10, %v529_v20 }
 0x1be   : > { %953 = vmatpush3.msk.msra.mxu1 %vm609_vm11, %v604_v19  ;;  %954 = vmatprep.mubr.msk.f32.mxu1 %vm1127_vm2, %v1126_v48 }
 0x290   : > { %v599_v21 = vpop.f32.mrb[2].mxu1 }
 0x291   : > { %v603_v22 = vmax.f32 %v599_v21, 0.0  ;;  %v951_v23 = vpop.f32.mrb[3].mxu1 }
 0x293   : > { %955 = vmatmul.mubr.msk.f32.vlgmr.msra.gmra.mrb[4].mxu1 %vm605_vm12, %v603_v22 }
 0x366   : > { %v679_v24 = vpop.f32.mrb[4].mxu1 }
 0x367   : > { %v903_v25 = vmul.f32 -1.442695, %v679_v24  ;;  %v956_v26 = vpop.f32.mrb[5].mxu1 }
 0x369   : > { %1021 = vpow2.f32 %v903_v25 }
 0x373   : > { %v1022_v27 = vpop.eup %1021 }
 0x374   : > { %v686_v28 = vadd.f32 1.0, %v1022_v27 }
 0x376   : > { %1023 = vrcp.f32 %v686_v28 }
 0x380   : > { %v1024_v31 = vpop.eup %1023 }
 0x381   : > { %v689_v32 = vadd.f32 1.0, %v1024_v31  ;;  %762 = vst.msk [vmem:[%s282_s14] sm:$0xff] %vm530_vm10, %v1024_v31 }
 0x383   : > { %v700_v33 = vrot.slane %v689_v32, %v699_v29  ;;  %v693_v34 = vrot.slane %v689_v32, %v692_v30  ;;  %v707_v37 = vrot.slane %v689_v32, %v706_v35  ;;  %v721_v38 = vrot.slane %v689_v32, %v720_v36 }
 0x384   : > { %v714_v41 = vrot.slane %v689_v32, %v713_v39  ;;  %v735_v42 = vrot.slane %v689_v32, %v734_v40  ;;  %v728_v44 = vrot.slane %v689_v32, %v727_v43  ;;  %v742_v46 = vrot.slane %v689_v32, %v741_v45 }
 0x385   : > { %702 = vbcast.lane.b32.xlu1 %v700_v33, 256  ;;  %695 = vbcast.lane.b32.xlu0 %v693_v34, 256 }
 0x389   : > { %709 = vbcast.lane.b32.xlu1 %v707_v37, 256  ;;  %723 = vbcast.lane.b32.xlu0 %v721_v38, 256 }
 0x38d   : > { %716 = vbcast.lane.b32.xlu1 %v714_v41, 256  ;;  %737 = vbcast.lane.b32.xlu0 %v735_v42, 256 }
 0x391   : > { %730 = vbcast.lane.b32.xlu1 %v728_v44, 256 }
 0x395   : > { %744 = vbcast.lane.b32.xlu1 %v742_v46, 256 }
 0x3f7   : > { %v703_v47 = vpop.permute.xlu1 %702  ;;  %v696_v48 = vpop.permute.xlu0 %695 }
 0x3f8   : > { %v747_v49 = vmul.f32 %v703_v47, %v1305_v8  ;;  %v746_v50 = vmul.f32 %v696_v48, %v1295_v5 }
 0x3fa   : > { %755 = vst.msk [vmem:[%s270_s15 + $0x8] sm:$0xff] %vm295_vm0, %v747_v49  ;;  %754 = vst.msk [vmem:[%s270_s15] sm:$0xff] %vm295_vm0, %v746_v50 }
 0x3fb   : > { %v710_v52 = vpop.permute.xlu1 %709  ;;  %v724_v53 = vpop.permute.xlu0 %723 }
 0x3fc   : > { %v748_v51 = vmul.f32 %v710_v52, %v1311_v10  ;;  %v750_v54 = vmul.f32 %v724_v53, %v1323_v12 }
 0x3fe   : > { %756 = vst.msk [vmem:[%s270_s15 + $0x10] sm:$0xff] %vm295_vm0, %v748_v51  ;;  %758 = vst.msk [vmem:[%s270_s15 + $0x20] sm:$0xff] %vm295_vm0, %v750_v54 }
 0x3ff   : > { %v717_v8 = vpop.permute.xlu1 %716  ;;  %v738_v5 = vpop.permute.xlu0 %737 }
 0x400   : > { %v749_v55 = vmul.f32 %v717_v8, %v1320_v11  ;;  %v752_v56 = vmul.f32 %v738_v5, %v1300_v7 }
 0x402   : > { %757 = vst.msk [vmem:[%s270_s15 + $0x18] sm:$0xff] %vm295_vm0, %v749_v55  ;;  %760 = vst.msk [vmem:[%s270_s15 + $0x30] sm:$0xff] %vm295_vm0, %v752_v56 }
 0x403   : > { %v731_v57 = vpop.permute.xlu1 %730 }
 0x404   : > { %v751_v10 = vmul.f32 %v731_v57, %v1330_v13 }
 0x406   : > { %759 = vst.msk [vmem:[%s270_s15 + $0x28] sm:$0xff] %vm295_vm0, %v751_v10 }
 0x407   : > { %v745_v12 = vpop.permute.xlu1 %744 }
 0x408   : > { %v753_v7 = vmul.f32 %v745_v12, %v1308_v9 }
 0x40a   : > { %761 = vst.msk [vmem:[%s270_s15 + $0x38] sm:$0xff] %vm295_vm0, %v753_v7 }
 0x40b   : > { %1068 = shalt.err (!%p1065_p4)
}
 0x40c   : > { %s1069_s19 = scalar_lea.hbm %s1391_s28, 1024  ;;  %s1073_s14 = scalar_lea.hbm %s1444_s5, 2048 }
 0x40d   : > { %p1070_p5 = scmp.ne.s32.totalorder %s1391_s28, %s1069_s19  ;;  %p1074_p1 = scmp.lt.u32.totalorder %s1391_s28, %s1444_s5 }
 0x40e   : > { %p1075_p3 = scmp.lt.u32.totalorder %s1073_s14, %s1069_s19  ;;  %p1077_p11 = scmp.lt.u32.totalorder %s1069_s19, %s1391_s28 }
 0x40f   : > { %p1071_p7 = pnand %p1070_p5, %p1452_p12 }
 0x410   : > { %p1076_p6 = por %p1075_p3, %p1074_p1 }
 0x411   : > { %p1072_p9 = pneg %p1071_p7 }
 0x412   : > { %p1078_p13 = por %p1077_p11, %p1076_p6 }
 0x414   : > { %p1079_p8 = pnand %p1078_p13, %p1072_p9 }
 0x416   : > { %1082 = shalt.err (!%p1079_p8)
}
 0x417   : > { %s1129_s17 = smov 128   ;;  %s1130_s26 = smov 8  }
 0x418   : > { %971 = dma.vmem_to_hbm [thread:$0]  (%p1452_p12), %s1393_s8, 1024, %s1391_s28, %s764_s12, %s1129_s17, %s1129_s17, %s1130_s26  }
 0x419 PF: > { %s799_s25 = sand.u32 1, %s1109_s21   ;;  %p1453_p10 = scmp.ne.s32.totalorder %s1450_s10, 0 }
 0x41a   : > { %p1454_p0 = scmp.ge.s32.totalorder %s1121_s24, 2  ;;  %s800_s13 = scalar_lea.sflag [#allocation4], %s799_s25 }
 0x41c   : > { %p978_p2 = pnand %p1454_p0, %p1453_p10 }
 0x41e   : > { %1104 = dma.done.wait (!%p978_p2), %s800_s13, 1024  }
 0x41f   : > { %1106 = vsyncadd (!%p978_p2), %s800_s13, 4294966272  ;;  %p20_p4 = scmp.ge.s32.totalorder %s1191_s27, 4   ;;  %s1455_s21 = smov %s1113_s22 }
 0x420   : > { %s1456_s22 = smov %s1117_s23  ;;  %s1457_s23 = smov %s1203_s30 }
 0x421   : > { %s1458_s24 = smov %s1191_s27  ;;  %22 = sbr.rel (!%p20_p4) target bundleno = 5 (0x5), region = 97 }
 0x428   :  { %812 = vsyncpa [#allocation3], 1 }
 0x429   :  { %814 = vsyncpa [#allocation3 + $0x1], 1 }
 0x42a   :  { %815 = vsyncpa [#allocation4], 1 }
 0x42b   :  { %817 = vsyncpa [#allocation4 + $0x1], 1 }

</bundles_post_ra>
